<compile_context>
chip_gen: v7x
topology: tpu7x:2x2x1
jax: 0.10.0
libtpu: 0.0.40
codegen_flags: <defaults>
</compile_context>

<pallas_src>
import functools
import math

import jax
import jax.numpy as jnp
import numpy as np
from jax import lax
from jax.experimental import pallas as pl
from jax.experimental.pallas import tpu as pltpu

_LANE = 128
_SUBLANE = 8
_ROW_TILE_MAX = 1024
_TARGET_BLOCK_BYTES = 3 * 1024 * 1024   # ~3 MiB blocks: pass-2 double-buffered
                                        # footprint ~12 MiB < 16 MiB (v5e default
                                        # scoped VMEM), well under v6e/v7x limits.


def _pick_tiling(n_rows, hw, itemsize, target_bytes=_TARGET_BLOCK_BYTES):
    """Byte-targeted (row_tile, hw_tile) for a (n_rows, hw) row-major array."""
    hw_full = pl.cdiv(hw, _LANE) * _LANE            # HW rounded up to a lane multiple

    if n_rows <= _SUBLANE:
        row_tile = n_rows                           # block dim == full array dim
    elif n_rows < 2 * _SUBLANE:
        row_tile = _SUBLANE
    else:
        # Keep >= 2 row tiles so the "parallel" axis can be split across cores.
        max_rows_by_bytes = max(_SUBLANE, target_bytes // max(1, hw_full * itemsize))
        row_tile = min(n_rows // 2, max_rows_by_bytes, _ROW_TILE_MAX)
        row_tile = max(_SUBLANE, (row_tile // _SUBLANE) * _SUBLANE)

    # Lane-dense HW tile sized so the (row_tile, hw_tile) block is ~target bytes.
    lane_budget = max(_LANE, target_bytes // max(1, row_tile * itemsize))
    hw_tile = int(min(hw_full, (lane_budget // _LANE) * _LANE))
    return int(row_tile), hw_tile


def _pool_kernel(x_ref, mean_ref, acc_ref, *, hw, hw_tile, inv_hw):
    """x_ref: (row_tile, hw_tile); mean_ref/acc_ref: (row_tile, 1) f32."""
    hw_idx = pl.program_id(1)

    @pl.when(hw_idx == 0)
    def _init():
        acc_ref[...] = jnp.zeros_like(acc_ref)

    xb = x_ref[...].astype(jnp.float32)             # (row_tile, hw_tile)

    if hw % hw_tile != 0:
        # Ragged HW tail: mask the out-of-bounds columns of the edge block
        # (unspecified padded data) instead of zero-padding x in HBM.
        col = lax.broadcasted_iota(jnp.int32, xb.shape, 1)
        xb = jnp.where(col < hw - hw_idx * hw_tile, xb, 0.0)

    acc_ref[...] += jnp.sum(xb, axis=-1, keepdims=True)

    @pl.when(hw_idx == pl.num_programs(1) - 1)
    def _finalize():
        mean_ref[...] = acc_ref[...] * inv_hw       # (row_tile, 1) pooled means


def _scale_kernel(x_ref, gate_ref, o_ref):
    """x_ref/o_ref: (row_tile, hw_tile) in x dtype; gate_ref: (row_tile, 1) in x dtype."""
    o_ref[...] = x_ref[...] * gate_ref[...]


@jax.jit
def channel_gate(x, conv_weight):
    """x: (B, C, H, W) NCHW. conv_weight: (k,) taps of Conv1d(1, 1, k, bias=False)."""
    B, C, H, W = x.shape
    HW = H * W
    n_rows = B * C
    item = jnp.dtype(x.dtype).itemsize
    row_tile, hw_tile = _pick_tiling(n_rows, HW, item)
    n_row = pl.cdiv(n_rows, row_tile)
    n_hw = pl.cdiv(HW, hw_tile)

    x2 = x.reshape(n_rows, HW)                      # free row-major collapse

    # ---- pass 1: global average pool over H*W (tiled streaming reduction) ----
    pooled = pl.pallas_call(
        functools.partial(_pool_kernel, hw=HW, hw_tile=hw_tile, inv_hw=1.0 / HW),
        out_shape=jax.ShapeDtypeStruct((n_rows, 1), jnp.float32),
        grid=(n_row, n_hw),
        in_specs=[pl.BlockSpec((row_tile, hw_tile), lambda r, h: (r, h))],
        out_specs=pl.BlockSpec((row_tile, 1), lambda r, h: (r, 0)),
        scratch_shapes=[pltpu.VMEM((row_tile, 1), jnp.float32)],
        compiler_params=pltpu.CompilerParams(
            dimension_semantics=("parallel", "arbitrary")),
        cost_estimate=pl.CostEstimate(
            flops=n_rows * HW, transcendentals=0,
            bytes_accessed=n_rows * HW * item + n_rows * 4),
    )(x2)

    # ---- tiny (B, C) channel conv (k shifted FMAs) + sigmoid in plain JAX ----
    y = pooled.reshape(B, C)                        # (B, C) f32
    k = conv_weight.shape[0]
    pad = (k - 1) // 2
    yp = jnp.pad(y, ((0, 0), (pad, pad)))
    conv = jnp.zeros_like(y)
    for j in range(k):                              # k is static (3)
        conv = conv + conv_weight[j].astype(jnp.float32) * yp[:, j:j + C]
    gate = jax.nn.sigmoid(conv).astype(x.dtype).reshape(n_rows, 1)

    # ---- pass 2: out = x * gate, streamed with lane-dense byte-sized tiles ---
    out2 = pl.pallas_call(
        _scale_kernel,
        out_shape=jax.ShapeDtypeStruct((n_rows, HW), x.dtype),
        grid=(n_row, n_hw),
        in_specs=[
            pl.BlockSpec((row_tile, hw_tile), lambda r, h: (r, h)),
            pl.BlockSpec((row_tile, 1), lambda r, h: (r, 0)),
        ],
        out_specs=pl.BlockSpec((row_tile, hw_tile), lambda r, h: (r, h)),
        compiler_params=pltpu.CompilerParams(
            dimension_semantics=("parallel", "parallel")),
        cost_estimate=pl.CostEstimate(
            flops=n_rows * HW, transcendentals=0,
            bytes_accessed=2 * n_rows * HW * item + n_rows * item),
    )(x2, gate)

    # TODO(synk): optional fused single-pass kernel (load x once, channel conv
    # via sublane rolls + in-kernel sigmoid, scale in place) when x fits in
    # VMEM would cut HBM traffic from 3x to 2x the tensor size.
    return out2.reshape(B, C, H, W)


def channel_gate_ref(x, conv_weight):
    """Pure-JAX reference mirroring the PyTorch forward."""
    B, C, H, W = x.shape
    y = jnp.mean(x.astype(jnp.float32), axis=(2, 3))           # (B, C)
    k = conv_weight.shape[0]
    pad = (k - 1) // 2
    yp = jnp.pad(y, ((0, 0), (pad, pad)))
    conv = jnp.zeros_like(y)
    for j in range(k):
        conv = conv + conv_weight[j] * yp[:, j:j + C]
    gate = jax.nn.sigmoid(conv).astype(x.dtype)[:, :, None, None]
    return x * gate


if __name__ == "__main__":
    key = jax.random.PRNGKey(0)
    kx, kw, kx2 = jax.random.split(key, 3)

    k_size = 3
    # Deterministic Conv1d(1,1,3,bias=False) weight init (PyTorch-style uniform bound).
    bound = 1.0 / math.sqrt(1 * k_size)
    conv_weight = jax.random.uniform(kw, (k_size,), minval=-bound, maxval=bound,
                                     dtype=jnp.float32)

    # Primary small shape from the module spec.
    x = jax.random.normal(kx, (2, 4, 16, 16), dtype=jnp.float32)
    out = jax.block_until_ready(channel_gate(x, conv_weight))
    np.testing.assert_allclose(np.asarray(out),
                               np.asarray(channel_gate_ref(x, conv_weight)),
                               rtol=1e-5, atol=1e-5)

    # Ragged shape: exercises masked edge blocks on both the row and HW axes.
    x2 = jax.random.normal(kx2, (2, 5, 9, 9), dtype=jnp.float32)
    out2 = jax.block_until_ready(channel_gate(x2, conv_weight))
    np.testing.assert_allclose(np.asarray(out2),
                               np.asarray(channel_gate_ref(x2, conv_weight)),
                               rtol=1e-5, atol=1e-5)

    print("KERNEL_OK")
</pallas_src>

<mosaic_0001>
module attributes {stable_mosaic.version = 11 : i64} {
  func.func @_pool_kernel(%arg0: i32, %arg1: i32, %arg2: memref<8x256xf32, #tpu.memory_space<vmem>>, %arg3: memref<8x1xf32, #tpu.memory_space<vmem>>, %arg4: memref<8x1xf32, #tpu.memory_space<vmem>>) attributes {dimension_semantics = [#tpu.dimension_semantics<parallel>, #tpu.dimension_semantics<arbitrary>], iteration_bounds = array<i64: 1, 1>, scalar_prefetch = 0 : i64, scratch_operands = 1 : i64, tpu.core_type = #tpu.core_type<tc>, window_params = [{transform_indices = @transform_0, window_bounds = array<i64: 8, 256>}, {transform_indices = @transform_1, window_bounds = array<i64: 8, 1>}]} {
    %c0_i32 = arith.constant 0 : i32
    %0 = arith.cmpi eq, %arg1, %c0_i32 : i32
    %1 = arith.extui %0 : i1 to i32
    %c0_i32_0 = arith.constant 0 : i32
    %2 = arith.cmpi ne, %1, %c0_i32_0 : i32
    scf.if %2 {
      %cst_8 = arith.constant 0.000000e+00 : f32
      %12 = vector.broadcast %cst_8 : f32 to vector<8x1xf32>
      %c0_9 = arith.constant 0 : index
      %c0_10 = arith.constant 0 : index
      %13 = vector.load %arg4[%c0_9, %c0_10] : memref<8x1xf32, #tpu.memory_space<vmem>>, vector<8x1xf32>
      tpu.vector_store %arg4[%c0_9, %c0_10], %12 {strides = array<i32>} : memref<8x1xf32, #tpu.memory_space<vmem>>, vector<8x1xf32>,
    } else {
    }
    %c0 = arith.constant 0 : index
    %c0_1 = arith.constant 0 : index
    %3 = vector.load %arg2[%c0, %c0_1] : memref<8x256xf32, #tpu.memory_space<vmem>>, vector<8x256xf32>
    %c0_2 = arith.constant 0 : index
    %c0_3 = arith.constant 0 : index
    %4 = vector.load %arg4[%c0_2, %c0_3] : memref<8x1xf32, #tpu.memory_space<vmem>>, vector<8x1xf32>
    %cst = arith.constant dense<0.000000e+00> : vector<8xf32>
    %5 = vector.multi_reduction <add>, %3, %cst [1] : vector<8x256xf32> to vector<8xf32>
    %6 = vector.shape_cast %5 : vector<8xf32> to vector<8x1xf32>
    %7 = arith.addf %4, %6 : vector<8x1xf32>
    %c0_4 = arith.constant 0 : index
    %c0_5 = arith.constant 0 : index
    %8 = vector.load %arg4[%c0_4, %c0_5] : memref<8x1xf32, #tpu.memory_space<vmem>>, vector<8x1xf32>
    tpu.vector_store %arg4[%c0_4, %c0_5], %7 {strides = array<i32>} : memref<8x1xf32, #tpu.memory_space<vmem>>, vector<8x1xf32>,
    %c0_i32_6 = arith.constant 0 : i32
    %9 = arith.cmpi eq, %arg1, %c0_i32_6 : i32
    %10 = arith.extui %9 : i1 to i32
    %c0_i32_7 = arith.constant 0 : i32
    %11 = arith.cmpi ne, %10, %c0_i32_7 : i32
    scf.if %11 {
      %c0_8 = arith.constant 0 : index
      %c0_9 = arith.constant 0 : index
      %12 = vector.load %arg4[%c0_8, %c0_9] : memref<8x1xf32, #tpu.memory_space<vmem>>, vector<8x1xf32>
      %cst_10 = arith.constant 3.906250e-03 : f32
      %13 = vector.broadcast %cst_10 : f32 to vector<8x1xf32>
      %14 = arith.mulf %12, %13 : vector<8x1xf32>
      %c0_11 = arith.constant 0 : index
      %c0_12 = arith.constant 0 : index
      %15 = vector.load %arg3[%c0_11, %c0_12] : memref<8x1xf32, #tpu.memory_space<vmem>>, vector<8x1xf32>
      tpu.vector_store %arg3[%c0_11, %c0_12], %14 {strides = array<i32>} : memref<8x1xf32, #tpu.memory_space<vmem>>, vector<8x1xf32>,
    } else {
    }
    return
  }
  func.func @transform_0(%arg0: i32, %arg1: i32) -> (i32, i32) {
    %c0_i32 = arith.constant 0 : i32
    return %arg0, %arg1 : i32, i32
  }
  func.func @transform_1(%arg0: i32, %arg1: i32) -> (i32, i32) {
    %c0_i32 = arith.constant 0 : i32
    %c0_i32_0 = arith.constant 0 : i32
    return %arg0, %c0_i32 : i32, i32
  }
}

module attributes {stable_mosaic.version = 11 : i64} {
  func.func @_scale_kernel(%arg0: i32, %arg1: i32, %arg2: memref<8x256xf32, #tpu.memory_space<vmem>>, %arg3: memref<8x1xf32, #tpu.memory_space<vmem>>, %arg4: memref<8x256xf32, #tpu.memory_space<vmem>>) attributes {dimension_semantics = [#tpu.dimension_semantics<parallel>, #tpu.dimension_semantics<parallel>], iteration_bounds = array<i64: 1, 1>, scalar_prefetch = 0 : i64, scratch_operands = 0 : i64, tpu.core_type = #tpu.core_type<tc>, window_params = [{transform_indices = @transform_0, window_bounds = array<i64: 8, 256>}, {transform_indices = @transform_1, window_bounds = array<i64: 8, 1>}, {transform_indices = @transform_2, window_bounds = array<i64: 8, 256>}]} {
    %c0 = arith.constant 0 : index
    %c0_0 = arith.constant 0 : index
    %0 = vector.load %arg2[%c0, %c0_0] : memref<8x256xf32, #tpu.memory_space<vmem>>, vector<8x256xf32>
    %c0_1 = arith.constant 0 : index
    %c0_2 = arith.constant 0 : index
    %1 = vector.load %arg3[%c0_1, %c0_2] : memref<8x1xf32, #tpu.memory_space<vmem>>, vector<8x1xf32>
    %2 = vector.broadcast %1 : vector<8x1xf32> to vector<8x256xf32>
    %3 = arith.mulf %0, %2 : vector<8x256xf32>
    %c0_3 = arith.constant 0 : index
    %c0_4 = arith.constant 0 : index
    %4 = vector.load %arg4[%c0_3, %c0_4] : memref<8x256xf32, #tpu.memory_space<vmem>>, vector<8x256xf32>
    tpu.vector_store %arg4[%c0_3, %c0_4], %3 {strides = array<i32>} : memref<8x256xf32, #tpu.memory_space<vmem>>, vector<8x256xf32>,
    return
  }
  func.func @transform_0(%arg0: i32, %arg1: i32) -> (i32, i32) {
    %c0_i32 = arith.constant 0 : i32
    return %arg0, %arg1 : i32, i32
  }
  func.func @transform_1(%arg0: i32, %arg1: i32) -> (i32, i32) {
    %c0_i32 = arith.constant 0 : i32
    %c0_i32_0 = arith.constant 0 : i32
    return %arg0, %c0_i32 : i32, i32
  }
  func.func @transform_2(%arg0: i32, %arg1: i32) -> (i32, i32) {
    %c0_i32 = arith.constant 0 : i32
    return %arg0, %arg1 : i32, i32
  }
}

</mosaic_0001>

<bundles_post_ra>
// kernel: channel_gate.2
= control target key start
LH: loop header
LB: loop body
LE: loop exit
PB: predicated region body
PF: predicated region fallthrough
CT: control target
= control target key end

     0   :  { %vm12_vm0 = vcmask 7168   ;;  %v34_v2 = vmov 0.0   ;;  %s54_s0 = inlined_call_operand.vmem [shape: f32[8,256], index: 0, kind: input, shape index: {}]   ;;  %s55_s1 = inlined_call_operand.vmem [shape: f32[8,1], index: 1, kind: output, shape index: {}]  }
   0x1   :  { %v14_v0 = vld [vmem:[%s54_s0] sm:$0xff]  ;;  %v15_v1 = vld [vmem:[%s54_s0 + $0x8] sm:$0xff]  ;;  %13 = vst.msk [vmem:[#allocation2] sm:$0xff] %vm12_vm0, %v34_v2 }
   0x2   :  { %v17_v3 = vadd.f32 %v15_v1, %v14_v0 }
   0x4   :  { %18 = vadd.xlane.f32.xlu0 %v17_v3 }
   0x8   :  { %v16_v4 = vld [vmem:[#allocation2] sm:$0xff] }
  0x91   :  { %v19_v5 = vpop.xlane.xlu0 %18 }
  0x92   :  { %v20_v6 = vadd.f32 %v19_v5, %v16_v4 }
  0x94   :  { %22 = vst.msk [vmem:[#allocation2] sm:$0xff] %vm12_vm0, %v20_v6 }
  0x9b   :  { %v26_v7 = vld [vmem:[#allocation2] sm:$0xff] }
  0x9c   :  { %v27_v8 = vmul.f32 0.00390625, %v26_v7 }
  0x9e   :  { %28 = vst.msk [vmem:[%s55_s1] sm:$0xff] %vm12_vm0, %v27_v8 }

// kernel: channel_gate.3
= control target key start
LH: loop header
LB: loop body
LE: loop exit
PB: predicated region body
PF: predicated region fallthrough
CT: control target
= control target key end

     0   :  { %v29_v0 = vmov 0   ;;  %s60_s1 = inlined_call_operand.vmem [shape: f32[8,1], index: 1, kind: input, shape index: {}]   ;;  %s61_s0 = inlined_call_operand.vmem [shape: f32[8,256], index: 0, kind: input, shape index: {}]   ;;  %s62_s2 = inlined_call_operand.vmem [shape: f32[8,256], index: 2, kind: output, shape index: {}]  }
   0x1   :  { %28 = vset.pattern.permute.xlu0 %v29_v0  ;;  %v13_v1 = vld [vmem:[%s60_s1] sm:$0xff]  ;;  %v12_v3 = vld [vmem:[%s61_s0 + $0x8] sm:$0xff] }
   0x2   :  { %16 = vperm.xlu0 %28, %v13_v1   ;;  %v11_v2 = vld [vmem:[%s61_s0] sm:$0xff] }
  0x81   :  { %v17_v4 = vpop.permute.xlu0 %16 }
  0x82   :  { %v19_v5 = vmul.f32 %v17_v4, %v11_v2  ;;  %v20_v6 = vmul.f32 %v17_v4, %v12_v3 }
  0x84   :  { %21 = vst [vmem:[%s62_s2] sm:$0xff] %v19_v5  ;;  %22 = vst [vmem:[%s62_s2 + $0x8] sm:$0xff] %v20_v6 }

</bundles_post_ra>
